<compile_context>
chip_gen: v7x
topology: tpu7x:2x2x1
jax: 0.10.0
libtpu: 0.0.40
codegen_flags: <defaults>
</compile_context>

<pallas_src>
import functools
import numpy as np
import jax
import jax.numpy as jnp
from jax import lax
from jax.experimental import pallas as pl
from jax.experimental.pallas import tpu as pltpu


_LANE = 128
_ACC_ELEMS = 16 * 1024            # ~16 f32 vregs live for the accumulator slab
_TARGET_BLOCK_BYTES = 1 << 20     # ~1 MiB input block per grid step


def _vmem_config():
    """Returns (per-block planning budget, scoped vmem limit), generation aware."""
    cap = 64 * 1024 * 1024
    try:
        cap = int(pltpu.get_tpu_info().vmem_capacity_bytes)
    except Exception:
        pass
    if cap >= 96 * 1024 * 1024:                      # v5e / v6e: 128 MiB VMEM
        return 48 * 1024 * 1024, 64 * 1024 * 1024
    return 24 * 1024 * 1024, 32 * 1024 * 1024        # v7x: 64 MiB per TensorCore


def _largest_divisor_leq(n, cap):
    cap = max(1, min(n, int(cap)))
    for d in range(cap, 0, -1):
        if n % d == 0:
            return d
    return 1


def _group_kernel(x_ref, o_ref, *, group_factor, group_step, n_out, scale,
                  acc_dtype, row_chunk):
    """Row-chunked window accumulation; works for any group_step.

    For output rows [r0, r0+rc), the w-th term of every window is the (strided)
    sublane slice x[:, r0*gs + w : : gs, :][:rc]  -> one full-vreg VPU add per
    window term and one dense store per chunk.
    """
    gf, gs = group_factor, group_step

    def read(r0, rc, w):
        if gs == 1:
            return x_ref[:, pl.ds(r0 + w, rc), :]
        return x_ref[:, pl.ds(r0 * gs + w, rc, stride=gs), :]

    def do_rows(r0, rc):
        acc = read(r0, rc, 0).astype(acc_dtype)
        for w in range(1, gf):                        # small static unrolled loop
            acc = acc + read(r0, rc, w).astype(acc_dtype)
        if scale != 1.0:
            acc = acc * scale
        o_ref[:, pl.ds(r0, rc), :] = acc.astype(o_ref.dtype)

    # TODO(synk): for very large group_factor (>=16, step==1) a banded 0/1-weight
    # MXU matmul (or a sliding running sum) would beat the gf-way VPU add.
    n_full = n_out // row_chunk
    rem = n_out - n_full * row_chunk
    if n_full > 0:
        if n_full <= 8:
            for c in range(n_full):                   # static starts
                do_rows(c * row_chunk, row_chunk)
        else:
            def body(c, carry):
                do_rows(pl.multiple_of(c * row_chunk, row_chunk), row_chunk)
                return carry
            lax.fori_loop(0, n_full, body, 0)
    if rem > 0:
        do_rows(n_full * row_chunk, rem)


def _plan(B, N, n_out, F, itemsize, budget):
    """Pick (bb, tile_f, row_chunk) for the (B, N, F) -> (B, n_out, F) kernel."""
    # Lane tile: full width when it fits; otherwise the biggest multiple of 128
    # that keeps double-buffered in+out blocks within the VMEM budget (cap 512).
    per_lane = 2 * (N + n_out) * itemsize
    max_f = max(_LANE, (budget // max(per_lane, 1)) // _LANE * _LANE)
    if F <= min(1024, max_f):
        tile_f = F                                    # full width, always layout-legal
    else:
        tile_f = min(512, max_f, max(_LANE, (F // _LANE) * _LANE))

    # Batch blocking: make each grid step move ~1 MiB of input (steps cost ~0.35us),
    # bounded by the VMEM budget.
    blk_in = N * tile_f * itemsize
    bb_cap = min(
        B,
        max(1, _TARGET_BLOCK_BYTES // max(blk_in, 1)),
        max(1, budget // max(2 * (N + n_out) * tile_f * itemsize, 1)),
        256,
    )
    bb = _largest_divisor_leq(B, bb_cap)

    # Keep >= 4 grid steps for v7x's two TensorCores on non-trivial inputs.
    total_bytes = B * N * F * itemsize
    if total_bytes >= (1 << 20):
        for _ in range(8):
            steps = (B // bb) * (-(-F // tile_f))
            if steps >= 4:
                break
            if bb > 1:
                bb = _largest_divisor_leq(B, bb // 2)
            elif F > _LANE and tile_f > _LANE:
                tile_f = max(_LANE, (tile_f // 2) // _LANE * _LANE)
            else:
                break

    # Accumulator chunk: keep acc + one loaded window inside the vreg file.
    row_chunk = max(1, min(32, _ACC_ELEMS // max(bb * tile_f, 1)))
    if row_chunk >= 8:
        row_chunk = (row_chunk // 8) * 8
    row_chunk = max(1, min(row_chunk, n_out))
    return bb, tile_f, row_chunk


def group_layer(x, dim=0, *, group_factor, group_operator="avg", group_step=1):
    assert group_operator in ("avg", "sum")
    assert group_factor >= 1 and group_step >= 1
    ndim = x.ndim
    dim = dim % ndim
    shape = x.shape
    N = int(shape[dim])
    assert N >= group_factor, "group_factor larger than the unfolded dimension"
    n_out = (N - group_factor) // group_step + 1

    B = int(np.prod(shape[:dim], dtype=np.int64)) if dim > 0 else 1
    F = int(np.prod(shape[dim + 1:], dtype=np.int64)) if dim < ndim - 1 else 1

    # Lane density: if trailing features are lane-sparse (< 128 lanes) and there
    # are other axes available, do a one-time layout change putting all non-unfold
    # axes on the lane axis (covers dim == last axis, where F == 1).
    use_moveaxis = (F < _LANE) and (B > 1)
    if use_moveaxis:
        x3 = jnp.moveaxis(x, dim, 0).reshape(1, N, B * F)
        Bk, Fk = 1, B * F
    else:
        x3 = x.reshape(B, N, F)
        Bk, Fk = B, F

    itemsize = jnp.dtype(x.dtype).itemsize
    budget, vmem_limit = _vmem_config()
    bb, tile_f, row_chunk = _plan(Bk, N, n_out, Fk, itemsize, budget)
    grid = (Bk // bb, pl.cdiv(Fk, tile_f))

    is_int = jnp.issubdtype(x.dtype, jnp.integer)
    acc_dtype = jnp.int32 if (is_int and group_operator == "sum") else jnp.float32
    scale = (1.0 / group_factor) if group_operator == "avg" else 1.0

    kernel = functools.partial(
        _group_kernel, group_factor=group_factor, group_step=group_step,
        n_out=n_out, scale=scale, acc_dtype=acc_dtype, row_chunk=row_chunk)

    out3 = pl.pallas_call(
        kernel,
        out_shape=jax.ShapeDtypeStruct((Bk, n_out, Fk), x.dtype),
        grid=grid,
        in_specs=[pl.BlockSpec((bb, N, tile_f), lambda b, j: (b, 0, j))],
        out_specs=pl.BlockSpec((bb, n_out, tile_f), lambda b, j: (b, 0, j)),
        compiler_params=pltpu.CompilerParams(
            dimension_semantics=("parallel", "parallel"),
            vmem_limit_bytes=vmem_limit),
        cost_estimate=pl.CostEstimate(
            flops=Bk * n_out * Fk * group_factor,
            transcendentals=0,
            bytes_accessed=(Bk * N * Fk + Bk * n_out * Fk) * itemsize),
    )(x3)
    # TODO(synk): optionally sweep pipeline_mode=pl.Buffered(3) on the input spec
    # if a trace ever shows exposed DMA at block boundaries (costs VMEM on v7x).

    if use_moveaxis:
        other = shape[:dim] + shape[dim + 1:]
        out = out3.reshape((n_out,) + other)
        return jnp.moveaxis(out, 0, dim)
    return out3.reshape(shape[:dim] + (n_out,) + shape[dim + 1:])


def _reference(x, dim, group_factor, group_operator, group_step):
    # pure-JAX reference mimicking torch unfold + reduce(-1)
    x_moved = jnp.moveaxis(x, dim, 0)
    n_out = (x_moved.shape[0] - group_factor) // group_step + 1
    windows = jnp.stack(
        [x_moved[i * group_step: i * group_step + group_factor] for i in range(n_out)],
        axis=0,
    )  # (n_out, group_factor, ...)
    red = jnp.mean(windows, axis=1) if group_operator == "avg" else jnp.sum(windows, axis=1)
    return jnp.moveaxis(red, 0, dim)


if __name__ == "__main__":
    key = jax.random.PRNGKey(0)
    # NCHW-style activations: (N=2, C=4, H=16, W=16)
    x = jax.random.normal(key, (2, 4, 16, 16), dtype=jnp.float32)

    # Case 1: group along channel dim, 'avg', step 1
    out = group_layer(x, dim=1, group_factor=2, group_operator="avg", group_step=1)
    out = jax.block_until_ready(out)
    np.testing.assert_allclose(np.asarray(out), np.asarray(_reference(x, 1, 2, "avg", 1)),
                               rtol=1e-5, atol=1e-5)
    assert out.shape == (2, 3, 16, 16)

    # Case 2: group along batch dim (module default dim=0), 'sum', step 1
    out = group_layer(x, dim=0, group_factor=2, group_operator="sum", group_step=1)
    out = jax.block_until_ready(out)
    np.testing.assert_allclose(np.asarray(out), np.asarray(_reference(x, 0, 2, "sum", 1)),
                               rtol=1e-5, atol=1e-5)
    assert out.shape == (1, 4, 16, 16)

    # Case 3: spatial dim, 'avg', step 2 (strided windows; F<128 -> lane-dense layout)
    out = group_layer(x, dim=2, group_factor=3, group_operator="avg", group_step=2)
    out = jax.block_until_ready(out)
    np.testing.assert_allclose(np.asarray(out), np.asarray(_reference(x, 2, 3, "avg", 2)),
                               rtol=1e-5, atol=1e-5)
    assert out.shape == (2, 4, 7, 16)

    # Case 4: last dim (trailing F == 1 -> lane-dense moveaxis layout), 'avg', step 3
    out = group_layer(x, dim=3, group_factor=4, group_operator="avg", group_step=3)
    out = jax.block_until_ready(out)
    np.testing.assert_allclose(np.asarray(out), np.asarray(_reference(x, 3, 4, "avg", 3)),
                               rtol=1e-5, atol=1e-5)
    assert out.shape == (2, 4, 16, 5)

    # Case 5: integer 'sum' (exact int32 accumulation)
    xi = jax.random.randint(jax.random.PRNGKey(0), (2, 4, 16, 16), -8, 8, dtype=jnp.int32)
    out = group_layer(xi, dim=1, group_factor=3, group_operator="sum", group_step=1)
    out = jax.block_until_ready(out)
    np.testing.assert_array_equal(np.asarray(out), np.asarray(_reference(xi, 1, 3, "sum", 1)))
    assert out.shape == (2, 2, 16, 16)

    print("KERNEL_OK")
</pallas_src>

<mosaic_0001>
module attributes {stable_mosaic.version = 11 : i64} {
  func.func @_group_kernel(%arg0: i32, %arg1: i32, %arg2: memref<2x4x256xf32, #tpu.memory_space<vmem>>, %arg3: memref<2x3x256xf32, #tpu.memory_space<vmem>>) attributes {dimension_semantics = [#tpu.dimension_semantics<parallel>, #tpu.dimension_semantics<parallel>], iteration_bounds = array<i64: 1, 1>, scalar_prefetch = 0 : i64, scratch_operands = 0 : i64, tpu.core_type = #tpu.core_type<tc>, window_params = [{transform_indices = @transform_0, window_bounds = array<i64: 2, 4, 256>}, {transform_indices = @transform_1, window_bounds = array<i64: 2, 3, 256>}]} {
    %c0 = arith.constant 0 : index
    %c0_0 = arith.constant 0 : index
    %c0_1 = arith.constant 0 : index
    %0 = vector.load %arg2[%c0, %c0_0, %c0_1] : memref<2x4x256xf32, #tpu.memory_space<vmem>>, vector<2x3x256xf32>
    %c0_2 = arith.constant 0 : index
    %c1 = arith.constant 1 : index
    %c0_3 = arith.constant 0 : index
    %1 = vector.load %arg2[%c0_2, %c1, %c0_3] : memref<2x4x256xf32, #tpu.memory_space<vmem>>, vector<2x3x256xf32>
    %2 = arith.addf %0, %1 : vector<2x3x256xf32>
    %cst = arith.constant 5.000000e-01 : f32
    %3 = vector.broadcast %cst : f32 to vector<2x3x256xf32>
    %4 = arith.mulf %2, %3 : vector<2x3x256xf32>
    %c0_4 = arith.constant 0 : index
    %c0_5 = arith.constant 0 : index
    %c0_6 = arith.constant 0 : index
    %5 = vector.load %arg3[%c0_4, %c0_5, %c0_6] : memref<2x3x256xf32, #tpu.memory_space<vmem>>, vector<2x3x256xf32>
    tpu.vector_store %arg3[%c0_4, %c0_5, %c0_6], %4 {strides = array<i32>} : memref<2x3x256xf32, #tpu.memory_space<vmem>>, vector<2x3x256xf32>,
    return
  }
  func.func @transform_0(%arg0: i32, %arg1: i32) -> (i32, i32, i32) {
    %c0_i32 = arith.constant 0 : i32
    %c0_i32_0 = arith.constant 0 : i32
    return %arg0, %c0_i32, %arg1 : i32, i32, i32
  }
  func.func @transform_1(%arg0: i32, %arg1: i32) -> (i32, i32, i32) {
    %c0_i32 = arith.constant 0 : i32
    %c0_i32_0 = arith.constant 0 : i32
    return %arg0, %c0_i32, %arg1 : i32, i32, i32
  }
}

</mosaic_0001>

<bundles_post_ra>
// kernel: tpu_custom_call.1
= control target key start
LH: loop header
LB: loop body
LE: loop exit
PB: predicated region body
PF: predicated region fallthrough
CT: control target
= control target key end

     0   :  { %6 = vsyncpa [#allocation3], 0  ;;  %s74_s6 = smov [#allocation2]   ;;  %s105_s0 = inlined_call_operand.hbm [shape: f32[2,4,256], index: 0, kind: input, shape index: {}]   ;;  %s106_s1 = inlined_call_operand.vmem [shape: f32[2,3,256], index: 1, kind: output, shape index: {}]  }
   0x1   :  { %s12_s7 = sshll.u32 %s74_s6, 4  ;;  %s50_s10 = scalar_lea.hbm %s105_s0, 256  ;;  %s13_s7 = int_to_ptr.vmem [resolvable:$true] %s12_s7 }
   0x2   :  { %p51_p0 = scmp.ne.s32.totalorder %s105_s0, %s50_s10  ;;  %p54_p1 = scmp.lt.u32.totalorder %s50_s10, %s105_s0 }
   0x4   :  { %p56_p2 = pnand %p54_p1, %p51_p0 }
   0x6   :  { %59 = shalt.err (!%p56_p2)
}
   0x7   :  { %s60_s15 = scalar_lea.vmem %s13_s7, 256  ;;  %p65_p4 = scmp.lt.s32.totalorder %s13_s7, %s13_s7 }
   0x8   :  { %p61_p3 = scmp.ne.s32.totalorder %s13_s7, %s60_s15  ;;  %p66_p5 = scmp.lt.s32.totalorder %s60_s15, %s60_s15 }
   0xa   :  { %p67_p6 = por %p66_p5, %p65_p4 }
   0xc   :  { %p68_p7 = pnand %p67_p6, %p61_p3 }
   0xe   :  { %71 = shalt.err (!%p68_p7)
}
   0xf   :  { %s75_s16 = smov 128   ;;  %s76_s17 = smov 8  }
  0x10   :  { %18 = dma.hbm_to_vmem [thread:$0]  %s105_s0, 256, %s13_s7, [#allocation3], %s75_s16, %s75_s16, %s76_s17  }
  0x11   :  { %72 = dma.done.wait [#allocation3], 256  }
  0x12   :  { %73 = vsyncadd [#allocation3], 4294967040  ;;  %v22_v0 = vld [vmem:[#allocation2] sm:$0x77]  ;;  %v23_v3 = vld [vmem:[#allocation2 + $0x8] sm:$0x77] }
  0x13   :  { %v24_v1 = vld [vmem:[#allocation2] sm:$0xee]  ;;  %v25_v4 = vld [vmem:[#allocation2 + $0x8] sm:$0xee] }
  0x14   :  { %v45_v2 = vrot.slane %v24_v1, 9  ;;  %v46_v5 = vrot.slane %v25_v4, 9 }
  0x16   :  { %v34_v6 = vadd.f32 %v45_v2, %v22_v0  ;;  %v35_v7 = vadd.f32 %v46_v5, %v23_v3 }
  0x18   :  { %v36_v8 = vmul.f32 0.5, %v34_v6  ;;  %v37_v9 = vmul.f32 0.5, %v35_v7 }
  0x1a   :  { %38 = vst [vmem:[%s106_s1] sm:$0x77] %v36_v8  ;;  %39 = vst [vmem:[%s106_s1 + $0x8] sm:$0x77] %v37_v9 }
  0x1b   :  { %44 = vsyncpa [#allocation3], 1 }

</bundles_post_ra>
